<compile_context>
chip_gen: v6e
topology: v6e:2x2x1
jax: 0.10.0
libtpu: 0.0.40
codegen_flags: <defaults>
</compile_context>

<pallas_src>
import jax
import jax.numpy as jnp
from jax.experimental import pallas as pl
from jax.experimental.pallas import tpu as pltpu

# ---------------- configuration (small, consistent with the module) -----------
B = 2               # batch
L = 16              # sequence length
ENCODER_DIM = 8     # conf.encoder_dim
E2 = ENCODER_DIM * 2                  # bi-directional encoder width = 16
EXPAND = True
W_FEAT = E2 * (4 if EXPAND else 2)    # conv kernel width = 64
NUM_FILTERS = 8                       # conf.num_filters
FILTER_SIZES = (2, 3, 4)              # conf.filter_sizes
DOC_ENC_DIM = 16                      # conf.doc_encoder_dim
FC_HIDDEN = 32                        # conf.fc_hidden
NUM_CLASSES = 2

KMAX = max(FILTER_SIZES)                       # 4
NF_TOT = NUM_FILTERS * len(FILTER_SIZES)       # 24
TROWS = L                                      # conv time rows computed per batch
PAD_T = L + 8                                  # zero-padded rdv time length (>= L+KMAX-1, mult of 8)
LANE = 128                                     # lane-padded im2col slab width (was W_FEAT=64)
FF_DIM = FC_HIDDEN + NF_TOT                    # 56
OUT_PAD = 128                                  # lane-dense padded output width


# ---------------- the single fused Pallas kernel -------------------------------
def _fused_forward_kernel(x0_ref, x1_ref,
                          wconv_ref, bconv_ref, mask_ref,
                          wenc_ref, benc_ref,
                          wfc_ref, bfc_ref,
                          wfin_ref, bfin_ref,
                          out_ref,
                          rdv_ref, lhs_ref, pf_ref, ff_ref):
    x0 = x0_ref[...]                 # (B, L, E2) f32
    x1 = x1_ref[...]

    # ---- Accumulator: rdv = [x0, x1, |x0-x1|, x0*x1]  (lanes 0:W_FEAT).
    # TODO(synk): Accumulator(conf) is undefined in the source; this pairwise
    # feature layout is a synthetic stand-in.
    # One dense zero store (pads time rows L:PAD_T and lanes W_FEAT:128), then
    # four small slice writes.
    rdv_ref[...] = jnp.zeros_like(rdv_ref)
    rdv_ref[:, 0:L, 0 * E2:1 * E2] = x0
    rdv_ref[:, 0:L, 1 * E2:2 * E2] = x1
    rdv_ref[:, 0:L, 2 * E2:3 * E2] = jnp.abs(x0 - x1)
    rdv_ref[:, 0:L, 3 * E2:4 * E2] = x0 * x1

    # ---- im2col: lhs[b*TROWS + t, k*LANE:(k+1)*LANE] = rdv[b, t+k, :]
    # Shifted rows come from XLU sublane rolls (register-level); every store is
    # a full (16,128), tile-aligned bf16 slab.
    for b in range(B):                          # static, tiny
        rdv_b = rdv_ref[b]                      # (PAD_T, LANE) f32
        for k in range(KMAX):
            shifted = rdv_b if k == 0 else pltpu.roll(rdv_b, shift=PAD_T - k, axis=0)
            lhs_ref[b * TROWS:(b + 1) * TROWS, k * LANE:(k + 1) * LANE] = (
                shifted[0:TROWS, :].astype(jnp.bfloat16))

    # ---- all filter sizes + both batch items in ONE bf16 MXU matmul:
    #      (B*TROWS, KMAX*LANE) @ (KMAX*LANE, NF_TOT) = (32,512) x (512,24), f32 acc.
    conv = jnp.dot(lhs_ref[...], wconv_ref[...],
                   preferred_element_type=jnp.float32)
    conv = jnp.maximum(conv + bconv_ref[...], 0.0)        # bias + ReLU
    # Zero out time rows beyond each filter's valid range (T_K = L - K + 1);
    # identical to -inf masking because valid post-ReLU values are >= 0.
    conv = conv * mask_ref[...]

    # ---- max-pool over time per batch (single XLU reduce).  The PyTorch
    # self.act(opt) after pooling is identity on already-ReLU'd values.
    opt = jnp.max(jnp.reshape(conv, (B, TROWS, NF_TOT)), axis=1)      # (B, NF_TOT)

    # ---- document encoder branch: one stacked matmul for both inputs.
    # TODO(synk): conf.encoder is undefined in the source module; mean-pool +
    # linear projection to doc_encoder_dim is used as a synthetic encoder.
    xs = jnp.concatenate([x0, x1], axis=0)                            # (2B, L, E2)
    m = jnp.mean(xs, axis=1)                                          # (2B, E2)
    e = jnp.dot(m.astype(jnp.bfloat16), wenc_ref[...],
                preferred_element_type=jnp.float32) + benc_ref[...]   # (2B, D)
    e0 = e[0:B, :]
    e1 = e[B:2 * B, :]

    # pairwise features assembled in VMEM scratch (slice writes, no lane concat)
    pf_ref[:, 0 * DOC_ENC_DIM:1 * DOC_ENC_DIM] = e0
    pf_ref[:, 1 * DOC_ENC_DIM:2 * DOC_ENC_DIM] = e1
    pf_ref[:, 2 * DOC_ENC_DIM:3 * DOC_ENC_DIM] = jnp.abs(e0 - e1)
    pf_ref[:, 3 * DOC_ENC_DIM:4 * DOC_ENC_DIM] = e0 * e1

    cont = jnp.dot(pf_ref[...].astype(jnp.bfloat16), wfc_ref[...],
                   preferred_element_type=jnp.float32)
    cont = jnp.maximum(cont + bfc_ref[...], 0.0)          # fc_in + ReLU (dropout = id)

    # ---- final classifier: assemble [cont | opt] in VMEM, one lane-dense matmul
    #      against the (56, 128) zero-padded final weight -> dense (B, 128) store.
    ff_ref[:, 0:FC_HIDDEN] = cont
    ff_ref[:, FC_HIDDEN:FF_DIM] = opt
    out_ref[...] = jnp.dot(ff_ref[...].astype(jnp.bfloat16), wfin_ref[...],
                           preferred_element_type=jnp.float32) + bfin_ref[...]


# ---------------- wrapper ------------------------------------------------------
@jax.jit
def han_cnn_forward(x0, x1, p):
    out_pad = pl.pallas_call(
        _fused_forward_kernel,
        out_shape=jax.ShapeDtypeStruct((B, OUT_PAD), jnp.float32),
        scratch_shapes=[
            pltpu.VMEM((B, PAD_T, LANE), jnp.float32),              # rdv (time+lane padded)
            pltpu.VMEM((B * TROWS, KMAX * LANE), jnp.bfloat16),     # im2col LHS
            pltpu.VMEM((B, 4 * DOC_ENC_DIM), jnp.float32),          # pairwise enc features
            pltpu.VMEM((B, FF_DIM), jnp.float32),                   # [cont | opt]
        ],
        compiler_params=pltpu.CompilerParams(vmem_limit_bytes=2 * 1024 * 1024),
    )(x0, x1,
      p["w_conv"], p["b_conv"], p["conv_mask"],
      p["W_enc"], p["b_enc"],
      p["W_fcin"], p["b_fcin"],
      p["W_fin_pad"], p["b_fin_pad"])
    return out_pad[:, :NUM_CLASSES]


# ---------------- parameter packing for the fused kernel -----------------------
def pack_params(params):
    # Fold all filter sizes into one (KMAX*LANE, NF_TOT) weight: each tap k of
    # each filter size lives in rows [k*LANE : k*LANE + W_FEAT]; the padded
    # lanes [W_FEAT:LANE] and taps beyond a filter's own K stay zero.
    w_conv = jnp.zeros((KMAX * LANE, NF_TOT), jnp.float32)
    b_conv = jnp.zeros((1, NF_TOT), jnp.float32)
    for i, (K, (w_t, bias)) in enumerate(zip(FILTER_SIZES, params["convs"])):
        for k in range(K):
            w_conv = w_conv.at[k * LANE:k * LANE + W_FEAT,
                               i * NUM_FILTERS:(i + 1) * NUM_FILTERS].set(w_t[k])
        b_conv = b_conv.at[:, i * NUM_FILTERS:(i + 1) * NUM_FILTERS].set(bias)

    # precomputed 0/1 mask over (time-row, output-column): row t valid iff t < L-K+1
    valid = jnp.array([L - K + 1 for K in FILTER_SIZES for _ in range(NUM_FILTERS)],
                      jnp.int32)[None, :]                              # (1, NF_TOT)
    t_row = jnp.arange(TROWS, dtype=jnp.int32)[:, None]                # (TROWS, 1)
    conv_mask = jnp.tile((t_row < valid).astype(jnp.float32), (B, 1))  # (B*TROWS, NF_TOT)

    # lane-pad the final classifier so the kernel output store is lane-dense
    w_fin_pad = jnp.zeros((FF_DIM, OUT_PAD), jnp.float32)
    w_fin_pad = w_fin_pad.at[:, :NUM_CLASSES].set(params["W_fin"])
    b_fin_pad = jnp.zeros((1, OUT_PAD), jnp.float32).at[:, :NUM_CLASSES].set(params["b_fin"])

    return {
        "w_conv": w_conv.astype(jnp.bfloat16),
        "b_conv": b_conv,
        "conv_mask": conv_mask,
        "W_enc": params["W_enc"].astype(jnp.bfloat16),
        "b_enc": params["b_enc"],
        "W_fcin": params["W_fcin"].astype(jnp.bfloat16),
        "b_fcin": params["b_fcin"],
        "W_fin_pad": w_fin_pad.astype(jnp.bfloat16),
        "b_fin_pad": b_fin_pad,
    }


# ---------------- pure-JAX reference (sanity check, f32 everywhere) -------------
def reference_forward(x0, x1, params):
    rdv = jnp.concatenate([x0, x1, jnp.abs(x0 - x1), x0 * x1], axis=-1)
    opts = []
    for K, (w_t, b) in zip(FILTER_SIZES, params["convs"]):
        T = L - K + 1
        acc = jnp.zeros((B, T, NUM_FILTERS), jnp.float32)
        for k in range(K):
            acc = acc + jnp.einsum("btw,wf->btf", rdv[:, k:k + T, :], w_t[k])
        acc = jnp.maximum(acc + b, 0.0)
        opts.append(jnp.max(acc, axis=1))
    opt = jnp.maximum(jnp.concatenate(opts, axis=1), 0.0)

    def enc(x):
        return jnp.mean(x, axis=1) @ params["W_enc"] + params["b_enc"]

    e0, e1 = enc(x0), enc(x1)
    cont = jnp.concatenate([e0, e1, jnp.abs(e0 - e1), e0 * e1], axis=1)
    cont = jnp.maximum(cont @ params["W_fcin"] + params["b_fcin"], 0.0)
    final = jnp.concatenate([cont, opt], axis=1)
    return final @ params["W_fin"] + params["b_fin"]


# ---------------- deterministic parameter construction --------------------------
def make_params(key):
    keys = jax.random.split(key, 16)
    convs = []
    for i, K in enumerate(FILTER_SIZES):
        # PyTorch conv weight (F, 1, K, W) -> stored transposed as (K, W, F)
        w_t = jax.random.normal(keys[i], (K, W_FEAT, NUM_FILTERS), jnp.float32) * 0.1
        b = jax.random.normal(keys[3 + i], (1, NUM_FILTERS), jnp.float32) * 0.1
        convs.append((w_t, b))
    return {
        "convs": convs,
        "W_enc": jax.random.normal(keys[6], (E2, DOC_ENC_DIM), jnp.float32) * 0.1,
        "b_enc": jax.random.normal(keys[7], (1, DOC_ENC_DIM), jnp.float32) * 0.1,
        "W_fcin": jax.random.normal(keys[8], (DOC_ENC_DIM * 4, FC_HIDDEN), jnp.float32) * 0.1,
        "b_fcin": jax.random.normal(keys[9], (1, FC_HIDDEN), jnp.float32) * 0.1,
        "W_fin": jax.random.normal(keys[10], (FF_DIM, NUM_CLASSES), jnp.float32) * 0.1,
        "b_fin": jax.random.normal(keys[11], (1, NUM_CLASSES), jnp.float32) * 0.1,
    }


if __name__ == "__main__":
    root = jax.random.PRNGKey(0)
    kx0, kx1, kp = jax.random.split(root, 3)
    x0 = jax.random.normal(kx0, (B, L, E2), jnp.float32)
    x1 = jax.random.normal(kx1, (B, L, E2), jnp.float32)
    params = make_params(kp)
    packed = pack_params(params)

    out = jax.block_until_ready(han_cnn_forward(x0, x1, packed))
    ref = reference_forward(x0, x1, params)

    assert out.shape == (B, NUM_CLASSES)
    assert bool(jnp.all(jnp.isfinite(out)))
    # bf16 MXU operands (f32 accumulation) vs. an all-f32 reference -> slightly
    # looser tolerance than a pure-f32 kernel would need.
    assert jnp.allclose(out, ref, rtol=2e-2, atol=2e-2), (out, ref)

    print("KERNEL_OK")
</pallas_src>

<mosaic_0001>
module attributes {stable_mosaic.version = 11 : i64} {
  func.func @_fused_forward_kernel(%arg0: memref<2x16x16xf32, #tpu.memory_space<vmem>>, %arg1: memref<2x16x16xf32, #tpu.memory_space<vmem>>, %arg2: memref<512x24xbf16, #tpu.memory_space<vmem>>, %arg3: memref<1x24xf32, #tpu.memory_space<vmem>>, %arg4: memref<32x24xf32, #tpu.memory_space<vmem>>, %arg5: memref<16x16xbf16, #tpu.memory_space<vmem>>, %arg6: memref<1x16xf32, #tpu.memory_space<vmem>>, %arg7: memref<64x32xbf16, #tpu.memory_space<vmem>>, %arg8: memref<1x32xf32, #tpu.memory_space<vmem>>, %arg9: memref<56x128xbf16, #tpu.memory_space<vmem>>, %arg10: memref<1x128xf32, #tpu.memory_space<vmem>>, %arg11: memref<2x128xf32, #tpu.memory_space<vmem>>, %arg12: memref<2x24x128xf32, #tpu.memory_space<vmem>>, %arg13: memref<32x512xbf16, #tpu.memory_space<vmem>>, %arg14: memref<2x64xf32, #tpu.memory_space<vmem>>, %arg15: memref<2x56xf32, #tpu.memory_space<vmem>>) attributes {dimension_semantics = [], scalar_prefetch = 0 : i64, scratch_operands = 4 : i64, tpu.core_type = #tpu.core_type<tc>} {
    %c0 = arith.constant 0 : index
    %c0_0 = arith.constant 0 : index
    %c0_1 = arith.constant 0 : index
    %0 = vector.load %arg0[%c0, %c0_0, %c0_1] : memref<2x16x16xf32, #tpu.memory_space<vmem>>, vector<2x16x16xf32>
    %c0_2 = arith.constant 0 : index
    %c0_3 = arith.constant 0 : index
    %c0_4 = arith.constant 0 : index
    %1 = vector.load %arg1[%c0_2, %c0_3, %c0_4] : memref<2x16x16xf32, #tpu.memory_space<vmem>>, vector<2x16x16xf32>
    %cst = arith.constant 0.000000e+00 : f32
    %2 = vector.broadcast %cst : f32 to vector<2x24x128xf32>
    %c0_5 = arith.constant 0 : index
    %c0_6 = arith.constant 0 : index
    %c0_7 = arith.constant 0 : index
    %3 = vector.load %arg12[%c0_5, %c0_6, %c0_7] : memref<2x24x128xf32, #tpu.memory_space<vmem>>, vector<2x24x128xf32>
    tpu.vector_store %arg12[%c0_5, %c0_6, %c0_7], %2 {strides = array<i32>} : memref<2x24x128xf32, #tpu.memory_space<vmem>>, vector<2x24x128xf32>,
    %c0_8 = arith.constant 0 : index
    %c0_9 = arith.constant 0 : index
    %c0_10 = arith.constant 0 : index
    %4 = vector.load %arg12[%c0_8, %c0_9, %c0_10] : memref<2x24x128xf32, #tpu.memory_space<vmem>>, vector<2x16x16xf32>
    tpu.vector_store %arg12[%c0_8, %c0_9, %c0_10], %0 {strides = array<i32>} : memref<2x24x128xf32, #tpu.memory_space<vmem>>, vector<2x16x16xf32>,
    %c0_11 = arith.constant 0 : index
    %c0_12 = arith.constant 0 : index
    %c16 = arith.constant 16 : index
    %5 = vector.load %arg12[%c0_11, %c0_12, %c16] : memref<2x24x128xf32, #tpu.memory_space<vmem>>, vector<2x16x16xf32>
    tpu.vector_store %arg12[%c0_11, %c0_12, %c16], %1 {strides = array<i32>} : memref<2x24x128xf32, #tpu.memory_space<vmem>>, vector<2x16x16xf32>,
    %6 = arith.subf %0, %1 : vector<2x16x16xf32>
    %7 = math.absf %6 : vector<2x16x16xf32>
    %c0_13 = arith.constant 0 : index
    %c0_14 = arith.constant 0 : index
    %c32 = arith.constant 32 : index
    %8 = vector.load %arg12[%c0_13, %c0_14, %c32] : memref<2x24x128xf32, #tpu.memory_space<vmem>>, vector<2x16x16xf32>
    tpu.vector_store %arg12[%c0_13, %c0_14, %c32], %7 {strides = array<i32>} : memref<2x24x128xf32, #tpu.memory_space<vmem>>, vector<2x16x16xf32>,
    %9 = arith.mulf %0, %1 : vector<2x16x16xf32>
    %c0_15 = arith.constant 0 : index
    %c0_16 = arith.constant 0 : index
    %c48 = arith.constant 48 : index
    %10 = vector.load %arg12[%c0_15, %c0_16, %c48] : memref<2x24x128xf32, #tpu.memory_space<vmem>>, vector<2x16x16xf32>
    tpu.vector_store %arg12[%c0_15, %c0_16, %c48], %9 {strides = array<i32>} : memref<2x24x128xf32, #tpu.memory_space<vmem>>, vector<2x16x16xf32>,
    %c0_17 = arith.constant 0 : index
    %c0_18 = arith.constant 0 : index
    %c0_19 = arith.constant 0 : index
    %11 = vector.load %arg12[%c0_17, %c0_18, %c0_19] : memref<2x24x128xf32, #tpu.memory_space<vmem>>, vector<1x24x128xf32>
    %12 = vector.shape_cast %11 : vector<1x24x128xf32> to vector<24x128xf32>
    %13 = vector.extract_strided_slice %12 {offsets = [0, 0], sizes = [16, 128], strides = [1, 1]} : vector<24x128xf32> to vector<16x128xf32>
    %14 = arith.truncf %13 : vector<16x128xf32> to vector<16x128xbf16>
    %c0_20 = arith.constant 0 : index
    %c0_21 = arith.constant 0 : index
    %15 = vector.load %arg13[%c0_20, %c0_21] : memref<32x512xbf16, #tpu.memory_space<vmem>>, vector<16x128xbf16>
    tpu.vector_store %arg13[%c0_20, %c0_21], %14 {strides = array<i32>} : memref<32x512xbf16, #tpu.memory_space<vmem>>, vector<16x128xbf16>,
    %c23_i32 = arith.constant 23 : i32
    %16 = tpu.dynamic_rotate %12 by %c23_i32 dim 0 : vector<24x128xf32>, i32 -> vector<24x128xf32>
    %17 = vector.extract_strided_slice %16 {offsets = [0, 0], sizes = [16, 128], strides = [1, 1]} : vector<24x128xf32> to vector<16x128xf32>
    %18 = arith.truncf %17 : vector<16x128xf32> to vector<16x128xbf16>
    %c0_22 = arith.constant 0 : index
    %c128 = arith.constant 128 : index
    %19 = vector.load %arg13[%c0_22, %c128] : memref<32x512xbf16, #tpu.memory_space<vmem>>, vector<16x128xbf16>
    tpu.vector_store %arg13[%c0_22, %c128], %18 {strides = array<i32>} : memref<32x512xbf16, #tpu.memory_space<vmem>>, vector<16x128xbf16>,
    %c22_i32 = arith.constant 22 : i32
    %20 = tpu.dynamic_rotate %12 by %c22_i32 dim 0 : vector<24x128xf32>, i32 -> vector<24x128xf32>
    %21 = vector.extract_strided_slice %20 {offsets = [0, 0], sizes = [16, 128], strides = [1, 1]} : vector<24x128xf32> to vector<16x128xf32>
    %22 = arith.truncf %21 : vector<16x128xf32> to vector<16x128xbf16>
    %c0_23 = arith.constant 0 : index
    %c256 = arith.constant 256 : index
    %23 = vector.load %arg13[%c0_23, %c256] : memref<32x512xbf16, #tpu.memory_space<vmem>>, vector<16x128xbf16>
    tpu.vector_store %arg13[%c0_23, %c256], %22 {strides = array<i32>} : memref<32x512xbf16, #tpu.memory_space<vmem>>, vector<16x128xbf16>,
    %c21_i32 = arith.constant 21 : i32
    %24 = tpu.dynamic_rotate %12 by %c21_i32 dim 0 : vector<24x128xf32>, i32 -> vector<24x128xf32>
    %25 = vector.extract_strided_slice %24 {offsets = [0, 0], sizes = [16, 128], strides = [1, 1]} : vector<24x128xf32> to vector<16x128xf32>
    %26 = arith.truncf %25 : vector<16x128xf32> to vector<16x128xbf16>
    %c0_24 = arith.constant 0 : index
    %c384 = arith.constant 384 : index
    %27 = vector.load %arg13[%c0_24, %c384] : memref<32x512xbf16, #tpu.memory_space<vmem>>, vector<16x128xbf16>
    tpu.vector_store %arg13[%c0_24, %c384], %26 {strides = array<i32>} : memref<32x512xbf16, #tpu.memory_space<vmem>>, vector<16x128xbf16>,
    %c1 = arith.constant 1 : index
    %c0_25 = arith.constant 0 : index
    %c0_26 = arith.constant 0 : index
    %28 = vector.load %arg12[%c1, %c0_25, %c0_26] : memref<2x24x128xf32, #tpu.memory_space<vmem>>, vector<1x24x128xf32>
    %29 = vector.shape_cast %28 : vector<1x24x128xf32> to vector<24x128xf32>
    %30 = vector.extract_strided_slice %29 {offsets = [0, 0], sizes = [16, 128], strides = [1, 1]} : vector<24x128xf32> to vector<16x128xf32>
    %31 = arith.truncf %30 : vector<16x128xf32> to vector<16x128xbf16>
    %c16_27 = arith.constant 16 : index
    %c0_28 = arith.constant 0 : index
    %32 = vector.load %arg13[%c16_27, %c0_28] : memref<32x512xbf16, #tpu.memory_space<vmem>>, vector<16x128xbf16>
    tpu.vector_store %arg13[%c16_27, %c0_28], %31 {strides = array<i32>} : memref<32x512xbf16, #tpu.memory_space<vmem>>, vector<16x128xbf16>,
    %c23_i32_29 = arith.constant 23 : i32
    %33 = tpu.dynamic_rotate %29 by %c23_i32_29 dim 0 : vector<24x128xf32>, i32 -> vector<24x128xf32>
    %34 = vector.extract_strided_slice %33 {offsets = [0, 0], sizes = [16, 128], strides = [1, 1]} : vector<24x128xf32> to vector<16x128xf32>
    %35 = arith.truncf %34 : vector<16x128xf32> to vector<16x128xbf16>
    %c16_30 = arith.constant 16 : index
    %c128_31 = arith.constant 128 : index
    %36 = vector.load %arg13[%c16_30, %c128_31] : memref<32x512xbf16, #tpu.memory_space<vmem>>, vector<16x128xbf16>
    tpu.vector_store %arg13[%c16_30, %c128_31], %35 {strides = array<i32>} : memref<32x512xbf16, #tpu.memory_space<vmem>>, vector<16x128xbf16>,
    %c22_i32_32 = arith.constant 22 : i32
    %37 = tpu.dynamic_rotate %29 by %c22_i32_32 dim 0 : vector<24x128xf32>, i32 -> vector<24x128xf32>
    %38 = vector.extract_strided_slice %37 {offsets = [0, 0], sizes = [16, 128], strides = [1, 1]} : vector<24x128xf32> to vector<16x128xf32>
    %39 = arith.truncf %38 : vector<16x128xf32> to vector<16x128xbf16>
    %c16_33 = arith.constant 16 : index
    %c256_34 = arith.constant 256 : index
    %40 = vector.load %arg13[%c16_33, %c256_34] : memref<32x512xbf16, #tpu.memory_space<vmem>>, vector<16x128xbf16>
    tpu.vector_store %arg13[%c16_33, %c256_34], %39 {strides = array<i32>} : memref<32x512xbf16, #tpu.memory_space<vmem>>, vector<16x128xbf16>,
    %c21_i32_35 = arith.constant 21 : i32
    %41 = tpu.dynamic_rotate %29 by %c21_i32_35 dim 0 : vector<24x128xf32>, i32 -> vector<24x128xf32>
    %42 = vector.extract_strided_slice %41 {offsets = [0, 0], sizes = [16, 128], strides = [1, 1]} : vector<24x128xf32> to vector<16x128xf32>
    %43 = arith.truncf %42 : vector<16x128xf32> to vector<16x128xbf16>
    %c16_36 = arith.constant 16 : index
    %c384_37 = arith.constant 384 : index
    %44 = vector.load %arg13[%c16_36, %c384_37] : memref<32x512xbf16, #tpu.memory_space<vmem>>, vector<16x128xbf16>
    tpu.vector_store %arg13[%c16_36, %c384_37], %43 {strides = array<i32>} : memref<32x512xbf16, #tpu.memory_space<vmem>>, vector<16x128xbf16>,
    %c0_38 = arith.constant 0 : index
    %c0_39 = arith.constant 0 : index
    %45 = vector.load %arg13[%c0_38, %c0_39] : memref<32x512xbf16, #tpu.memory_space<vmem>>, vector<32x512xbf16>
    %c0_40 = arith.constant 0 : index
    %c0_41 = arith.constant 0 : index
    %46 = vector.load %arg2[%c0_40, %c0_41] : memref<512x24xbf16, #tpu.memory_space<vmem>>, vector<512x24xbf16>
    %cst_42 = arith.constant dense<0.000000e+00> : vector<32x24xf32>
    %47 = tpu.matmul %45, %46, %cst_42 {dimension_numbers = #tpu.dot_dimension_numbers<[1], [0], [0], [1], [0, 0, 1, 1], [], []>} : vector<32x512xbf16>, vector<512x24xbf16>, vector<32x24xf32> -> vector<32x24xf32>
    %c0_43 = arith.constant 0 : index
    %c0_44 = arith.constant 0 : index
    %48 = vector.load %arg3[%c0_43, %c0_44] : memref<1x24xf32, #tpu.memory_space<vmem>>, vector<1x24xf32>
    %49 = vector.broadcast %48 : vector<1x24xf32> to vector<32x24xf32>
    %50 = arith.addf %47, %49 : vector<32x24xf32>
    %cst_45 = arith.constant 0.000000e+00 : f32
    %51 = vector.broadcast %cst_45 : f32 to vector<32x24xf32>
    %52 = arith.maximumf %50, %51 : vector<32x24xf32>
    %c0_46 = arith.constant 0 : index
    %c0_47 = arith.constant 0 : index
    %53 = vector.load %arg4[%c0_46, %c0_47] : memref<32x24xf32, #tpu.memory_space<vmem>>, vector<32x24xf32>
    %54 = arith.mulf %52, %53 : vector<32x24xf32>
    %55 = vector.shape_cast %54 : vector<32x24xf32> to vector<2x16x24xf32>
    %cst_48 = arith.constant dense<0xFF800000> : vector<2x24xf32>
    %56 = vector.multi_reduction <maximumf>, %55, %cst_48 [1] : vector<2x16x24xf32> to vector<2x24xf32>
    %57 = tpu.concatenate %0, %1 in 0 : vector<2x16x16xf32>, vector<2x16x16xf32> -> vector<4x16x16xf32>
    %cst_49 = arith.constant dense<0.000000e+00> : vector<4x16xf32>
    %58 = vector.multi_reduction <add>, %57, %cst_49 [1] : vector<4x16x16xf32> to vector<4x16xf32>
    %cst_50 = arith.constant 1.600000e+01 : f32
    %59 = vector.broadcast %cst_50 : f32 to vector<4x16xf32>
    %60 = arith.divf %58, %59 : vector<4x16xf32>
    %61 = arith.truncf %60 : vector<4x16xf32> to vector<4x16xbf16>
    %c0_51 = arith.constant 0 : index
    %c0_52 = arith.constant 0 : index
    %62 = vector.load %arg5[%c0_51, %c0_52] : memref<16x16xbf16, #tpu.memory_space<vmem>>, vector<16x16xbf16>
    %cst_53 = arith.constant dense<0.000000e+00> : vector<4x16xf32>
    %63 = tpu.matmul %61, %62, %cst_53 {dimension_numbers = #tpu.dot_dimension_numbers<[1], [0], [0], [1], [0, 0, 1, 1], [], []>} : vector<4x16xbf16>, vector<16x16xbf16>, vector<4x16xf32> -> vector<4x16xf32>
    %c0_54 = arith.constant 0 : index
    %c0_55 = arith.constant 0 : index
    %64 = vector.load %arg6[%c0_54, %c0_55] : memref<1x16xf32, #tpu.memory_space<vmem>>, vector<1x16xf32>
    %65 = vector.broadcast %64 : vector<1x16xf32> to vector<4x16xf32>
    %66 = arith.addf %63, %65 : vector<4x16xf32>
    %67 = vector.extract_strided_slice %66 {offsets = [0, 0], sizes = [2, 16], strides = [1, 1]} : vector<4x16xf32> to vector<2x16xf32>
    %68 = vector.extract_strided_slice %66 {offsets = [2, 0], sizes = [2, 16], strides = [1, 1]} : vector<4x16xf32> to vector<2x16xf32>
    %c0_56 = arith.constant 0 : index
    %c0_57 = arith.constant 0 : index
    %69 = vector.load %arg14[%c0_56, %c0_57] : memref<2x64xf32, #tpu.memory_space<vmem>>, vector<2x16xf32>
    tpu.vector_store %arg14[%c0_56, %c0_57], %67 {strides = array<i32>} : memref<2x64xf32, #tpu.memory_space<vmem>>, vector<2x16xf32>,
    %c0_58 = arith.constant 0 : index
    %c16_59 = arith.constant 16 : index
    %70 = vector.load %arg14[%c0_58, %c16_59] : memref<2x64xf32, #tpu.memory_space<vmem>>, vector<2x16xf32>
    tpu.vector_store %arg14[%c0_58, %c16_59], %68 {strides = array<i32>} : memref<2x64xf32, #tpu.memory_space<vmem>>, vector<2x16xf32>,
    %71 = arith.subf %67, %68 : vector<2x16xf32>
    %72 = math.absf %71 : vector<2x16xf32>
    %c0_60 = arith.constant 0 : index
    %c32_61 = arith.constant 32 : index
    %73 = vector.load %arg14[%c0_60, %c32_61] : memref<2x64xf32, #tpu.memory_space<vmem>>, vector<2x16xf32>
    tpu.vector_store %arg14[%c0_60, %c32_61], %72 {strides = array<i32>} : memref<2x64xf32, #tpu.memory_space<vmem>>, vector<2x16xf32>,
    %74 = arith.mulf %67, %68 : vector<2x16xf32>
    %c0_62 = arith.constant 0 : index
    %c48_63 = arith.constant 48 : index
    %75 = vector.load %arg14[%c0_62, %c48_63] : memref<2x64xf32, #tpu.memory_space<vmem>>, vector<2x16xf32>
    tpu.vector_store %arg14[%c0_62, %c48_63], %74 {strides = array<i32>} : memref<2x64xf32, #tpu.memory_space<vmem>>, vector<2x16xf32>,
    %c0_64 = arith.constant 0 : index
    %c0_65 = arith.constant 0 : index
    %76 = vector.load %arg14[%c0_64, %c0_65] : memref<2x64xf32, #tpu.memory_space<vmem>>, vector<2x64xf32>
    %77 = arith.truncf %76 : vector<2x64xf32> to vector<2x64xbf16>
    %c0_66 = arith.constant 0 : index
    %c0_67 = arith.constant 0 : index
    %78 = vector.load %arg7[%c0_66, %c0_67] : memref<64x32xbf16, #tpu.memory_space<vmem>>, vector<64x32xbf16>
    %cst_68 = arith.constant dense<0.000000e+00> : vector<2x32xf32>
    %79 = tpu.matmul %77, %78, %cst_68 {dimension_numbers = #tpu.dot_dimension_numbers<[1], [0], [0], [1], [0, 0, 1, 1], [], []>} : vector<2x64xbf16>, vector<64x32xbf16>, vector<2x32xf32> -> vector<2x32xf32>
    %c0_69 = arith.constant 0 : index
    %c0_70 = arith.constant 0 : index
    %80 = vector.load %arg8[%c0_69, %c0_70] : memref<1x32xf32, #tpu.memory_space<vmem>>, vector<1x32xf32>
    %81 = vector.broadcast %80 : vector<1x32xf32> to vector<2x32xf32>
    %82 = arith.addf %79, %81 : vector<2x32xf32>
    %cst_71 = arith.constant 0.000000e+00 : f32
    %83 = vector.broadcast %cst_71 : f32 to vector<2x32xf32>
    %84 = arith.maximumf %82, %83 : vector<2x32xf32>
    %c0_72 = arith.constant 0 : index
    %c0_73 = arith.constant 0 : index
    %85 = vector.load %arg15[%c0_72, %c0_73] : memref<2x56xf32, #tpu.memory_space<vmem>>, vector<2x32xf32>
    tpu.vector_store %arg15[%c0_72, %c0_73], %84 {strides = array<i32>} : memref<2x56xf32, #tpu.memory_space<vmem>>, vector<2x32xf32>,
    %c0_74 = arith.constant 0 : index
    %c32_75 = arith.constant 32 : index
    %86 = vector.load %arg15[%c0_74, %c32_75] : memref<2x56xf32, #tpu.memory_space<vmem>>, vector<2x24xf32>
    tpu.vector_store %arg15[%c0_74, %c32_75], %56 {strides = array<i32>} : memref<2x56xf32, #tpu.memory_space<vmem>>, vector<2x24xf32>,
    %c0_76 = arith.constant 0 : index
    %c0_77 = arith.constant 0 : index
    %87 = vector.load %arg15[%c0_76, %c0_77] : memref<2x56xf32, #tpu.memory_space<vmem>>, vector<2x56xf32>
    %88 = arith.truncf %87 : vector<2x56xf32> to vector<2x56xbf16>
    %c0_78 = arith.constant 0 : index
    %c0_79 = arith.constant 0 : index
    %89 = vector.load %arg9[%c0_78, %c0_79] : memref<56x128xbf16, #tpu.memory_space<vmem>>, vector<56x128xbf16>
    %cst_80 = arith.constant dense<0.000000e+00> : vector<2x128xf32>
    %90 = tpu.matmul %88, %89, %cst_80 {dimension_numbers = #tpu.dot_dimension_numbers<[1], [0], [0], [1], [0, 0, 1, 1], [], []>} : vector<2x56xbf16>, vector<56x128xbf16>, vector<2x128xf32> -> vector<2x128xf32>
    %c0_81 = arith.constant 0 : index
    %c0_82 = arith.constant 0 : index
    %91 = vector.load %arg10[%c0_81, %c0_82] : memref<1x128xf32, #tpu.memory_space<vmem>>, vector<1x128xf32>
    %92 = vector.broadcast %91 : vector<1x128xf32> to vector<2x128xf32>
    %93 = arith.addf %90, %92 : vector<2x128xf32>
    %c0_83 = arith.constant 0 : index
    %c0_84 = arith.constant 0 : index
    %94 = vector.load %arg11[%c0_83, %c0_84] : memref<2x128xf32, #tpu.memory_space<vmem>>, vector<2x128xf32>
    tpu.vector_store %arg11[%c0_83, %c0_84], %93 {strides = array<i32>} : memref<2x128xf32, #tpu.memory_space<vmem>>, vector<2x128xf32>,
    return
  }
}

</mosaic_0001>

<bundles_post_ra>
// kernel: han_cnn_forward.1
= control target key start
LH: loop header
LB: loop body
LE: loop exit
PB: predicated region body
PF: predicated region fallthrough
CT: control target
= control target key end

     0   :  { %vm54_vm0 = vcmask 130048   ;;  %s1302_s23 = smov 16   ;;  %s1304_s22 = smov 48   ;;  %v1305_v40 = vmov 0.0   ;;  %vm758_vm1 = vcmask 1041409   ;;  %vm760_vm2 = vcmask 1042434   ;;  %s1665_s0 = inlined_call_operand.vmem [shape: f32[2,16,16], index: 0, kind: input, shape index: {}]   ;;  %s1666_s1 = inlined_call_operand.vmem [shape: f32[2,16,16], index: 1, kind: input, shape index: {}]   ;;  %s1667_s2 = inlined_call_operand.vmem [shape: bf16[512,24], index: 2, kind: input, shape index: {}]   ;;  %s1668_s3 = inlined_call_operand.vmem [shape: f32[1,24], index: 3, kind: input, shape index: {}]   ;;  %s1669_s4 = inlined_call_operand.vmem [shape: f32[32,24], index: 4, kind: input, shape index: {}]   ;;  %s1670_s5 = inlined_call_operand.vmem [shape: bf16[16,16], index: 5, kind: input, shape index: {}]   ;;  %s1671_s6 = inlined_call_operand.vmem [shape: f32[1,16], index: 6, kind: input, shape index: {}]   ;;  %s1672_s7 = inlined_call_operand.vmem [shape: bf16[64,32], index: 7, kind: input, shape index: {}]   ;;  %s1673_s8 = inlined_call_operand.vmem [shape: f32[1,32], index: 8, kind: input, shape index: {}]   ;;  %s1674_s9 = inlined_call_operand.vmem [shape: bf16[56,128], index: 9, kind: input, shape index: {}]   ;;  %s1675_s10 = inlined_call_operand.vmem [shape: f32[1,128], index: 10, kind: input, shape index: {}]   ;;  %s1676_s11 = inlined_call_operand.hbm [shape: f32[2,128], index: 11, kind: output, shape index: {}]  }
   0x1   :  { %v44_v0 = vld [vmem:[%s1666_s1] sm:$0xff]  ;;  %v45_v2 = vld [vmem:[%s1666_s1 + $0x8] sm:$0xff]  ;;  %v1387_v8 = vld [vmem:[%s1666_s1 + $0x10] sm:$0xff]  ;;  %48 = vst [vmem:[#allocation2] sm:$0xff] %v1305_v40  ;;  %vm762_vm3 = vcmask 1043459  }
   0x2   :  { %v40_v1 = vld [vmem:[%s1665_s0] sm:$0xff]  ;;  %63 = vrot.lane.b32.xlu0 %v44_v0, %s1302_s23  ;;  %v714_v3 = vsel %vm54_vm0, %v44_v0, 0.0  ;;  %v715_v6 = vsel %vm54_vm0, %v45_v2, 0.0  ;;  %v41_v7 = vld [vmem:[%s1665_s0 + $0x8] sm:$0xff]  ;;  %v1393_v12 = vld [vmem:[%s1666_s1 + $0x18] sm:$0xff]  ;;  %v723_v16 = vsel %vm54_vm0, %v1387_v8, 0.0 }
   0x3   :  { %v80_v4 = vsub.f32 %v40_v1, %v44_v0  ;;  %v696_v5 = vsel %vm54_vm0, %v40_v1, 0.0  ;;  %v716_v9 = vadd.f32 %v715_v6, %v714_v3  ;;  %v81_v10 = vsub.f32 %v41_v7, %v45_v2  ;;  %v1398_v13 = vld [vmem:[%s1665_s0 + $0x10] sm:$0xff]  ;;  %v1405_v17 = vld [vmem:[%s1665_s0 + $0x18] sm:$0xff]  ;;  %s1303_s1 = smov 32   ;;  %49 = vst [vmem:[#allocation2 + $0x8] sm:$0xff] %v1305_v40  ;;  %51 = vst [vmem:[#allocation2 + $0x18] sm:$0xff] %v1305_v40 }
   0x4   :  { %v697_v11 = vsel %vm54_vm0, %v41_v7, 0.0  ;;  %v1227_v18 = vld [vmem:[%s1667_s2 + $0x78] sm:$0xff]   ;;  %v724_v21 = vsel %vm54_vm0, %v1393_v12, 0.0  ;;  %v82_v22 = vsub.f32 %v1398_v13, %v1387_v8  ;;  %v109_v24 = vmul.f32 %v44_v0, %v40_v1  ;;  %52 = vst [vmem:[#allocation2 + $0x20] sm:$0xff] %v1305_v40  ;;  %v1231_v41 = vld [vmem:[%s1667_s2 + $0x70] sm:$0xff]   ;;  %55 = vst.msk [vmem:[#allocation2] sm:$0xff] %vm54_vm0, %v40_v1 }
   0x5   :  { %v84_v14 = vand.u32 2147483647, %v80_v4  ;;  %v698_v15 = vadd.f32 %v697_v11, %v696_v5  ;;  %v717_v19 = vrot.slane %v716_v9, 4  ;;  %v85_v20 = vand.u32 2147483647, %v81_v10  ;;  %1123 = vmatprep.subr.bf16.mxu0 %v1227_v18  ;;  %v1228_v28 = vld [vmem:[%s1667_s2 + $0xf8] sm:$0xff]  }
   0x6   :  { %65 = vrot.lane.b32.xlu0 %v45_v2, %s1302_s23  ;;  %v725_v25 = vadd.f32 %v724_v21, %v723_v16  ;;  %v705_v26 = vsel %vm54_vm0, %v1398_v13, 0.0  ;;  %v706_v27 = vsel %vm54_vm0, %v1405_v17, 0.0  ;;  %v1229_v32 = vld [vmem:[%s1667_s2 + $0x38] sm:$0xff]   ;;  %v86_v34 = vand.u32 2147483647, %v82_v22  ;;  %1151 = vmatprep.subr.bf16.mxu1 %v1228_v28  ;;  %56 = vst.msk [vmem:[#allocation2 + $0x8] sm:$0xff] %vm54_vm0, %v41_v7 }
   0x7   :  { %92 = vrot.lane.b32.xlu1 %v84_v14, %s1303_s1  ;;  %v699_v23 = vrot.slane %v698_v15, 4  ;;  %v707_v31 = vadd.f32 %v706_v27, %v705_v26  ;;  %v718_v33 = vadd.f32 %v717_v19, %v716_v9  ;;  %v1230_v35 = vld [vmem:[%s1667_s2 + $0xb8] sm:$0xff]   ;;  %v110_v37 = vmul.f32 %v45_v2, %v41_v7  ;;  %57 = vst.msk [vmem:[#allocation2 + $0x18] sm:$0xff] %vm54_vm0, %v1398_v13  ;;  %v1232_v43 = vld [vmem:[%s1667_s2 + $0xf0] sm:$0xff]   ;;  %v1235_v51 = vld [vmem:[%s1667_s2 + $0x68] sm:$0xff]  }
   0x8   :  { %v726_v30 = vrot.slane %v725_v25, 4  ;;  %58 = vst.msk [vmem:[#allocation2 + $0x20] sm:$0xff] %vm54_vm0, %v1405_v17  ;;  %1124 = vmatpush3.bf16.msra.mxu0 %v1229_v32  ;;  %1152 = vmatpush3.bf16.msra.mxu1 %v1230_v35  ;;  %v1233_v45 = vld [vmem:[%s1667_s2 + $0x30] sm:$0xff]   ;;  %v83_v47 = vsub.f32 %v1405_v17, %v1393_v12  ;;  %v1236_v53 = vld [vmem:[%s1667_s2 + $0xe8] sm:$0xff]   ;;  %v111_v58 = vmul.f32 %v1387_v8, %v1398_v13  ;;  %v1239_v62 = vld [vmem:[%s1667_s2 + $0x60] sm:$0xff]  }
   0x9   :  { %v700_v29 = vadd.f32 %v699_v23, %v698_v15  ;;  %v708_v39 = vrot.slane %v707_v31, 4  ;;  %1125 = vmatprep.subr.bf16.mxu0 %v1231_v41  ;;  %v719_v44 = vrot.slane %v718_v33, 2  ;;  %v1234_v49 = vld [vmem:[%s1667_s2 + $0xb0] sm:$0xff]   ;;  %1153 = vmatprep.subr.bf16.mxu1 %v1232_v43  ;;  %v1237_v55 = vld [vmem:[%s1667_s2 + $0x28] sm:$0xff]   ;;  %v1240_v0 = vld [vmem:[%s1667_s2 + $0xe0] sm:$0xff]   ;;  %v112_v2 = vmul.f32 %v1393_v12, %v1405_v17 }
   0xa   :  { %117 = vrot.lane.b32.xlu0 %v109_v24, %s1304_s22  ;;  %v727_v38 = vadd.f32 %v726_v30, %v725_v25  ;;  %v87_v57 = vand.u32 2147483647, %v83_v47  ;;  %v1238_v60 = vld [vmem:[%s1667_s2 + $0xa8] sm:$0xff]   ;;  %v1241_v3 = vld [vmem:[%s1667_s2 + $0x20] sm:$0xff]   ;;  %v1243_v7 = vld [vmem:[%s1667_s2 + $0x58] sm:$0xff]  }
   0xb   :  { %v701_v36 = vrot.slane %v700_v29, 2  ;;  %94 = vrot.lane.b32.xlu1 %v85_v20, %s1303_s1  ;;  %v709_v42 = vadd.f32 %v708_v39, %v707_v31  ;;  %v720_v54 = vadd.f32 %v719_v44, %v718_v33  ;;  %v1242_v5 = vld [vmem:[%s1667_s2 + $0xa0] sm:$0xff]   ;;  %v1244_v9 = vld [vmem:[%s1667_s2 + $0xd8] sm:$0xff]   ;;  %v1247_v15 = vld [vmem:[%s1667_s2 + $0x50] sm:$0xff]  }
   0xc   :  { %v728_v46 = vrot.slane %v727_v38, 2  ;;  %1126 = vmatpush3.bf16.msra.mxu0 %v1233_v45  ;;  %1154 = vmatpush3.bf16.msra.mxu1 %v1234_v49  ;;  %v1245_v11 = vld [vmem:[%s1667_s2 + $0x18] sm:$0xff]   ;;  %v1248_v17 = vld [vmem:[%s1667_s2 + $0xd0] sm:$0xff]   ;;  %v1251_v23 = vld [vmem:[%s1667_s2 + $0x48] sm:$0xff]  }
   0xd   :  { %v710_v48 = vrot.slane %v709_v42, 2  ;;  %v702_v50 = vadd.f32 %v701_v36, %v700_v29  ;;  %1127 = vmatprep.subr.bf16.mxu0 %v1235_v51  ;;  %1155 = vmatprep.subr.bf16.mxu1 %v1236_v53  ;;  %v721_v63 = vrot.slane %v720_v54, 1  ;;  %v1246_v13 = vld [vmem:[%s1667_s2 + $0x98] sm:$0xff]   ;;  %v1249_v19 = vld [vmem:[%s1667_s2 + $0x10] sm:$0xff]   ;;  %v1252_v25 = vld [vmem:[%s1667_s2 + $0xc8] sm:$0xff]  }
   0xe   :  { %67 = vrot.lane.b32.xlu0 %v1387_v8, %s1302_s23  ;;  %v729_v56 = vadd.f32 %v728_v46, %v727_v38  ;;  %v1250_v20 = vld [vmem:[%s1667_s2 + $0x90] sm:$0xff]   ;;  %v1253_v27 = vld [vmem:[%s1667_s2 + $0x8] sm:$0xff]   ;;  %v1255_v31 = vld [vmem:[%s1667_s2 + $0x40] sm:$0xff]  }
   0xf   :  { %119 = vrot.lane.b32.xlu1 %v110_v37, %s1304_s22  ;;  %v711_v52 = vadd.f32 %v710_v48, %v709_v42  ;;  %v703_v59 = vrot.slane %v702_v50, 1  ;;  %v722_v8 = vadd.f32 %v721_v63, %v720_v54  ;;  %v1254_v28 = vld [vmem:[%s1667_s2 + $0x88] sm:$0xff]   ;;  %v1256_v33 = vld [vmem:[%s1667_s2 + $0xc0] sm:$0xff]  }
  0x10   :  { %1128 = vmatpush3.bf16.msra.mxu0 %v1237_v55  ;;  %1156 = vmatpush3.bf16.msra.mxu1 %v1238_v60  ;;  %v730_v1 = vrot.slane %v729_v56, 1  ;;  %v1257_v35 = vld [vmem:[%s1667_s2] sm:$0xff]  }
  0x11   :  { %v712_v61 = vrot.slane %v711_v52, 1  ;;  %v704_v4 = vadd.f32 %v703_v59, %v702_v50  ;;  %1129 = vmatprep.subr.bf16.mxu0 %v1239_v62  ;;  %1157 = vmatprep.subr.bf16.mxu1 %v1240_v0  ;;  %v735_v16 = vmul.f32 0.0625, %v722_v8  ;;  %v1258_v36 = vld [vmem:[%s1667_s2 + $0x80] sm:$0xff]  }
  0x12   :  { %96 = vrot.lane.b32.xlu0 %v86_v34, %s1303_s1  ;;  %v731_v10 = vadd.f32 %v730_v1, %v729_v56 }
  0x13   :  { %69 = vrot.lane.b32.xlu1 %v1393_v12, %s1302_s23  ;;  %v713_v6 = vadd.f32 %v712_v61, %v711_v52  ;;  %v733_v12 = vmul.f32 0.0625, %v704_v4  ;;  %v739_v24 = vpack.c.bf16 %v735_v16, %v735_v16 }
  0x14   :  { %1130 = vmatpush3.bf16.msra.mxu0 %v1241_v3  ;;  %1158 = vmatpush3.bf16.msra.mxu1 %v1242_v5  ;;  %v736_v18 = vmul.f32 0.0625, %v731_v10 }
  0x15   :  { %1131 = vmatprep.subr.bf16.mxu0 %v1243_v7  ;;  %1159 = vmatprep.subr.bf16.mxu1 %v1244_v9  ;;  %v734_v14 = vmul.f32 0.0625, %v713_v6  ;;  %v737_v21 = vpack.c.bf16 %v733_v12, %v733_v12  ;;  %v756_v32 = vunpack.c.l.b16 %v739_v24 }
  0x16   :  { %121 = vrot.lane.b32.xlu0 %v111_v58, %s1304_s22  ;;  %v740_v26 = vpack.c.bf16 %v736_v18, %v736_v18 }
  0x17   :  { %98 = vrot.lane.b32.xlu1 %v87_v57, %s1303_s1  ;;  %v738_v22 = vpack.c.bf16 %v734_v14, %v734_v14  ;;  %v754_v29 = vunpack.c.l.b16 %v737_v21 }
  0x18   :  { %1132 = vmatpush3.bf16.msra.mxu0 %v1245_v11  ;;  %1160 = vmatpush3.bf16.msra.mxu1 %v1246_v13  ;;  %v757_v34 = vunpack.c.l.b16 %v740_v26 }
  0x19   :  { %1133 = vmatprep.subr.bf16.mxu0 %v1247_v15  ;;  %1161 = vmatprep.subr.bf16.mxu1 %v1248_v17  ;;  %v755_v30 = vunpack.c.l.b16 %v738_v22 }
  0x1b   :  { %123 = vrot.lane.b32.xlu1 %v112_v2, %s1304_s22  ;;  %v759_v37 = vsel %vm758_vm1, %v755_v30, %v754_v29 }
  0x1c   :  { %1134 = vmatpush3.bf16.msra.mxu0 %v1249_v19  ;;  %1162 = vmatpush3.bf16.msra.mxu1 %v1250_v20  ;;  %v761_v38 = vsel %vm760_vm2, %v756_v32, %v759_v37 }
  0x1d   :  { %1135 = vmatprep.subr.bf16.mxu0 %v1251_v23  ;;  %1163 = vmatprep.subr.bf16.mxu1 %v1252_v25  ;;  %v1542_v39 = vsel %vm762_vm3, %v757_v34, %v761_v38 }
  0x20   :  { %1136 = vmatpush3.bf16.msra.mxu0 %v1253_v27  ;;  %1164 = vmatpush3.bf16.msra.mxu1 %v1254_v28 }
  0x21   :  { %1137 = vmatprep.subr.bf16.mxu0 %v1255_v31  ;;  %1165 = vmatprep.subr.bf16.mxu1 %v1256_v33 }
  0x24   :  { %1138 = vmatpush3.bf16.msra.mxu0 %v1257_v35  ;;  %1166 = vmatpush3.bf16.msra.mxu1 %v1258_v36 }
  0x25   :  { %1191 = vmatprep.subr.bf16.mxu0 %v1305_v40  ;;  %1197 = vmatprep.subr.bf16.mxu1 %v1305_v40 }
  0x26   :  { %16 = vsyncpa [#allocation7], 0  ;;  %vm75_vm4 = vcmask 261248   ;;  %vm104_vm5 = vcmask 392448   ;;  %vm129_vm6 = vcmask 523648   ;;  %v150_v48 = vlaneseq  ;;  %v1265_v28 = vld [vmem:[%s1670_s5] sm:$0xff]  }
  0x27   :  { %v149_v56 = vrot.slane %v1305_v40, 1  ;;  %v167_v57 = vrot.slane %v1305_v40, 2  ;;  %v183_v62 = vrot.slane %v1305_v40, 3  ;;  %vm1306_vm10 = vmmov 0  }
  0x28   :  { %v1552_v52 = vshrl.u32 %v150_v48, 7  ;;  %vm677_vm11 = vcmask 195584   ;;  %vm814_vm12 = vcmask 123904   ;;  %vm820_vm13 = vcmask 257154  }
  0x29   :  { %vm830_vm14 = vcmask 386304   ;;  %vm837_vm15 = vcmask 517504   ;;  %vm925_vm2 = vcmask 254976   ;;  %vm933_vm3 = vcmask 451840  }
  0x2a   :  { %vm152_vm7 = vcmp.lt.s32.totalorder %v1552_v52, 7  ;;  %vm168_vm8 = vcmp.lt.s32.totalorder %v1552_v52, 6  ;;  %vm184_vm9 = vcmp.lt.s32.totalorder %v1552_v52, 5  ;;  %v1051_v52 = vld [vmem:[%s1668_s3] ss:$0 sm:$0xff] }
  0x74   :  { %v64_v41 = vpop.permute.xlu0 %63 }
  0x75   :  { %76 = vst.msk [vmem:[#allocation2] sm:$0xff] %vm75_vm4, %v64_v41 }
  0x78   :  { %v66_v43 = vpop.permute.xlu0 %65 }
  0x79   :  { %v93_v42 = vpop.permute.xlu1 %92  ;;  %77 = vst.msk [vmem:[#allocation2 + $0x8] sm:$0xff] %vm75_vm4, %v66_v43 }
  0x7a   :  { %105 = vst.msk [vmem:[#allocation2] sm:$0xff] %vm104_vm5, %v93_v42 }
  0x7c   :  { %v118_v45 = vpop.permute.xlu0 %117 }
  0x7d   :  { %v95_v44 = vpop.permute.xlu1 %94  ;;  %130 = vst.msk [vmem:[#allocation2] sm:$0xff] %vm129_vm6, %v118_v45 }
  0x7e   :  { %106 = vst.msk [vmem:[#allocation2 + $0x8] sm:$0xff] %vm104_vm5, %v95_v44 }
  0x80   :  { %v68_v47 = vpop.permute.xlu0 %67 }
  0x81   :  { %v120_v46 = vpop.permute.xlu1 %119  ;;  %78 = vst.msk [vmem:[#allocation2 + $0x18] sm:$0xff] %vm75_vm4, %v68_v47 }
  0x82   :  { %131 = vst.msk [vmem:[#allocation2 + $0x8] sm:$0xff] %vm129_vm6, %v120_v46 }
  0x84   :  { %v134_v49 = vld [vmem:[#allocation2] sm:$0xff]  ;;  %v97_v51 = vpop.permute.xlu0 %96 }
  0x85   :  { %v70_v50 = vpop.permute.xlu1 %69  ;;  %107 = vst.msk [vmem:[#allocation2 + $0x18] sm:$0xff] %vm104_vm5, %v97_v51  ;;  %v1107_v53 = vpack.c.bf16 %v134_v49, %v134_v49  ;;  %v147_v54 = vrot.slane %v134_v49, 1  ;;  %v165_v55 = vrot.slane %v134_v49, 2  ;;  %v181_v58 = vrot.slane %v134_v49, 3 }
  0x86   :  { %79 = vst.msk [vmem:[#allocation2 + $0x20] sm:$0xff] %vm75_vm4, %v70_v50  ;;  %v764_v49 = vpack.c.b16 %v1542_v39, %v1542_v39  ;;  %vm972_vm4 = vcmask 457728  }
  0x87   :  { %145 = vst [vmem:[#allocation3] sm:$0xf] %v1107_v53 }
  0x88   :  { %v122_v61 = vpop.permute.xlu0 %121 }
  0x89   :  { %v135_v59 = vld [vmem:[#allocation2 + $0x8] sm:$0xff]  ;;  %v99_v60 = vpop.permute.xlu1 %98  ;;  %132 = vst.msk [vmem:[#allocation2 + $0x18] sm:$0xff] %vm129_vm6, %v122_v61 }
  0x8a   :  { %v148_v63 = vrot.slane %v135_v59, 1  ;;  %v166_v0 = vrot.slane %v135_v59, 2  ;;  %v182_v1 = vrot.slane %v135_v59, 3  ;;  %108 = vst.msk [vmem:[#allocation2 + $0x20] sm:$0xff] %vm104_vm5, %v99_v60  ;;  %v1108_v2 = vpack.c.bf16 %v135_v59, %v135_v59 }
  0x8c   :  { %146 = vst [vmem:[#allocation3 + $0x10] sm:$0xf] %v1108_v2  ;;  %v153_v3 = vsel %vm152_vm7, %v148_v63, %v149_v56  ;;  %v154_v4 = vsel %vm152_vm7, %v147_v54, %v148_v63  ;;  %v169_v5 = vsel %vm168_vm8, %v166_v0, %v167_v57  ;;  %v170_v6 = vsel %vm168_vm8, %v165_v55, %v166_v0  ;;  %v669_v2 = vld [vmem:[%s1669_s4] sm:$0xff] }
  0x8d   :  { %v124_v7 = vpop.permute.xlu1 %123  ;;  %v1109_v8 = vpack.c.bf16 %v154_v4, %v154_v4  ;;  %v1110_v9 = vpack.c.bf16 %v153_v3, %v153_v3  ;;  %v1111_v10 = vpack.c.bf16 %v170_v6, %v170_v6  ;;  %v1112_v11 = vpack.c.bf16 %v169_v5, %v169_v5  ;;  %v1272_v3 = vld [vmem:[%s1672_s7 + $0x18] sm:$0xff]   ;;  %v670_v6 = vld [vmem:[%s1669_s4 + $0x8] sm:$0xff] }
  0x8e   :  { %133 = vst.msk [vmem:[#allocation2 + $0x20] sm:$0xff] %vm129_vm6, %v124_v7  ;;  %v185_v12 = vsel %vm184_vm9, %v182_v1, %v183_v62  ;;  %v186_v13 = vsel %vm184_vm9, %v181_v58, %v182_v1 }
  0x8f   :  { %163 = vst [vmem:[#allocation3 + $0x4] sm:$0xf] %v1109_v8  ;;  %164 = vst [vmem:[#allocation3 + $0x14] sm:$0xf] %v1110_v9  ;;  %v1113_v14 = vpack.c.bf16 %v186_v13, %v186_v13  ;;  %v1114_v15 = vpack.c.bf16 %v185_v12, %v185_v12 }
  0x90   :  { %179 = vst [vmem:[#allocation3 + $0x8] sm:$0xf] %v1111_v10  ;;  %180 = vst [vmem:[#allocation3 + $0x18] sm:$0xf] %v1112_v11  ;;  %v198_v16 = vld [vmem:[#allocation2 + $0x18] sm:$0xff]  ;;  %v1273_v11 = vld [vmem:[%s1672_s7 + $0x10] sm:$0xff]  }
  0x91   :  { %195 = vst [vmem:[#allocation3 + $0xc] sm:$0xf] %v1113_v14  ;;  %196 = vst [vmem:[#allocation3 + $0x1c] sm:$0xf] %v1114_v15  ;;  %v1115_v17 = vpack.c.bf16 %v198_v16, %v198_v16  ;;  %v211_v18 = vrot.slane %v198_v16, 1  ;;  %v226_v19 = vrot.slane %v198_v16, 2 }
  0x92   :  { %v241_v20 = vrot.slane %v198_v16, 3 }
  0x93   :  { %209 = vst [vmem:[#allocation3 + $0x20] sm:$0xf] %v1115_v17  ;;  %v1259_v26 = vld [vmem:[#allocation3] ss:$16 sps:$4 sm:$0xff]  }
  0x95   :  { %v199_v21 = vld [vmem:[#allocation2 + $0x20] sm:$0xff] }
  0x96   :  { %v212_v22 = vrot.slane %v199_v21, 1  ;;  %v227_v23 = vrot.slane %v199_v21, 2  ;;  %v242_v24 = vrot.slane %v199_v21, 3  ;;  %v1116_v25 = vpack.c.bf16 %v199_v21, %v199_v21  ;;  %v1261_v27 = vld [vmem:[#allocation3 + $0x4] ss:$16 sps:$4 sm:$0xff]  }
  0x97   :  { %v1262_v29 = vld [vmem:[#allocation3 + $0x8] ss:$16 sps:$4 sm:$0xff]   ;;  %599 = vmatprep.mubr.bf16.mxu0 %v1261_v27 }
  0x98   :  { %210 = vst [vmem:[#allocation3 + $0x30] sm:$0xf] %v1116_v25  ;;  %v214_v30 = vsel %vm152_vm7, %v212_v22, %v149_v56  ;;  %v215_v31 = vsel %vm152_vm7, %v211_v18, %v212_v22  ;;  %v229_v32 = vsel %vm168_vm8, %v227_v23, %v167_v57  ;;  %v230_v33 = vsel %vm168_vm8, %v226_v19, %v227_v23  ;;  %v1264_v34 = vld [vmem:[#allocation3 + $0xc] ss:$16 sps:$4 sm:$0xff]  }
  0x99   :  { %v1117_v35 = vpack.c.bf16 %v215_v31, %v215_v31  ;;  %v1118_v36 = vpack.c.bf16 %v214_v30, %v214_v30  ;;  %v1119_v37 = vpack.c.bf16 %v230_v33, %v230_v33  ;;  %v1120_v38 = vpack.c.bf16 %v229_v32, %v229_v32  ;;  %600 = vmatmul.mubr.bf16.vlgmr.msra.gmra.mxu0 %v1259_v26  ;;  %v1274_v22 = vld [vmem:[%s1672_s7 + $0x8] sm:$0xff]   ;;  %v1092_v26 = vld [vmem:[%s1671_s6] ss:$0 sm:$0xff] }
  0x9a   :  { %v244_v41 = vsel %vm184_vm9, %v242_v24, %v183_v62  ;;  %v245_v42 = vsel %vm184_vm9, %v241_v20, %v242_v24  ;;  %648 = vmatprep.mubr.bf16.mxu1 %v1264_v34  ;;  %1192 = vmatpush3.bf16.msra.mxu0 %v1265_v28  ;;  %v1275_v32 = vld [vmem:[%s1672_s7] sm:$0xff]   ;;  %v671_v34 = vld [vmem:[%s1669_s4 + $0x10] sm:$0xff] }
  0x9b   :  { %224 = vst [vmem:[#allocation3 + $0x24] sm:$0xf] %v1117_v35  ;;  %225 = vst [vmem:[#allocation3 + $0x34] sm:$0xf] %v1118_v36  ;;  %v1121_v43 = vpack.c.bf16 %v245_v42, %v245_v42  ;;  %v1122_v44 = vpack.c.bf16 %v244_v41, %v244_v41  ;;  %649 = vmatmul.mubr.bf16.vlgmr.msra.gmra.mxu1 %v1262_v29  ;;  %1209 = vmatprep.subr.bf16.mxu0 %v1305_v40 }
  0x9c   :  { %239 = vst [vmem:[#allocation3 + $0x28] sm:$0xf] %v1119_v37  ;;  %240 = vst [vmem:[#allocation3 + $0x38] sm:$0xf] %v1120_v38  ;;  %1198 = vmatpush3.bf16.msra.mxu1 %v1272_v3  ;;  %v672_v38 = vld [vmem:[%s1669_s4 + $0x18] sm:$0xff] }
  0x9d   :  { %254 = vst [vmem:[#allocation3 + $0x2c] sm:$0xf] %v1121_v43  ;;  %255 = vst [vmem:[#allocation3 + $0x3c] sm:$0xf] %v1122_v44  ;;  %1199 = vmatprep.subr.bf16.mxu1 %v1305_v40 }
  0x9f   :  { %v1270_v46 = vld [vmem:[#allocation3 + $0x20] ss:$16 sps:$4 sm:$0xff]  }
  0xa0   :  { %1200 = vmatpush3.bf16.msra.mxu1 %v1273_v11 }
  0xa1   :  { %1201 = vmatprep.subr.bf16.mxu1 %v1305_v40 }
  0xa2   :  { %v1266_v45 = vld [vmem:[#allocation3 + $0x24] ss:$16 sps:$4 sm:$0xff]  }
  0xa3   :  { %607 = vmatprep.mubr.bf16.mxu0 %v1266_v45  ;;  %v1271_v48 = vld [vmem:[#allocation3 + $0x28] ss:$16 sps:$4 sm:$0xff]  }
  0xa4   :  { %v1268_v47 = vld [vmem:[#allocation3 + $0x2c] ss:$16 sps:$4 sm:$0xff]   ;;  %608 = vmatmul.mubr.bf16.gmra.mxu0 %v1270_v46  ;;  %1202 = vmatpush3.bf16.msra.mxu1 %v1274_v22 }
  0xa5   :  { %656 = vmatprep.mubr.bf16.mxu1 %v1268_v47  ;;  %1193 = vmatprep.mubr.msk.bf16.mxu0 %vm1306_vm10, %v1305_v40 }
  0xa6   :  { %657 = vmatmul.mubr.bf16.gmra.mxu1 %v1271_v48  ;;  %1203 = vmatprep.subr.bf16.mxu1 %v1305_v40 }
  0xa7   :  { %1205 = vmatprep.mubr.msk.bf16.mxu1 %vm1306_vm10, %v1305_v40 }
  0xa8   :  { %1204 = vmatpush3.bf16.msra.mxu1 %v1275_v32 }
  0xac   :  { %1194 = vmatmul.mubr.msk.bf16.vlgmr.msra.gmra.mxu0 %vm54_vm0, %v764_v49  ;;  %vm880_vm0 = vcmask 523264  }
  0xad   :  { %1217 = vmatprep.mubr.msk.bf16.mxu0 %vm1306_vm10, %v1305_v40 }
 0x159   :  { %v1139_v50 = vpop.f32.mrf.mxu0 }
 0x15b   :  { %v1167_v51 = vpop.f32.mrf.mxu1  ;;  %v1140_v53 = vpop.f32.mrf.mxu0 }
 0x15c   :  { %v1141_v54 = vadd.f32 %v1140_v53, %v1139_v50 }
 0x15d   :  { %v1168_v55 = vpop.f32.mrf.mxu1  ;;  %v1142_v56 = vpop.f32.mrf.mxu0 }
 0x15e   :  { %v602_v57 = vadd.f32 %v1141_v54, %v1051_v52  ;;  %v1169_v58 = vadd.f32 %v1168_v55, %v1167_v51 }
 0x15f   :  { %v1170_v59 = vpop.f32.mrf.mxu1  ;;  %v1143_v60 = vpop.f32.mrf.mxu0 }
 0x160   :  { %v651_v61 = vadd.f32 %v1169_v58, %v602_v57  ;;  %v1144_v39 = vadd.f32 %v1143_v60, %v1142_v56 }
 0x161   :  { %v1171_v62 = vpop.f32.mrf.mxu1 }
 0x162   :  { %v665_v63 = vmax.f32 %v651_v61, 0.0  ;;  %v605_v0 = vadd.f32 %v1144_v39, %v1051_v52  ;;  %v1172_v1 = vadd.f32 %v1171_v62, %v1170_v59 }
 0x164   :  { %v654_v4 = vadd.f32 %v1172_v1, %v605_v0  ;;  %v1145_v5 = vpop.f32.mrf.mxu0  ;;  %v673_v7 = vmul.f32 %v669_v2, %v665_v63 }
 0x166   :  { %v666_v8 = vmax.f32 %v654_v4, 0.0  ;;  %v1173_v9 = vpop.f32.mrf.mxu1  ;;  %v1146_v10 = vpop.f32.mrf.mxu0  ;;  %v678_v18 = vsel %vm677_vm11, %v673_v7, -inf  ;;  %v1277_v7 = vld [vmem:[%s1674_s9 + $0x10] sm:$0xff]  }
 0x167   :  { %v1147_v12 = vadd.f32 %v1146_v10, %v1145_v5  ;;  %v1276_v5 = vld [vmem:[%s1674_s9 + $0x18] ss:$0 sps:$4 sm:$0xff]   ;;  %v1095_v10 = vld [vmem:[%s1673_s8] ss:$0 sm:$0xff]  ;;  %s1307_s8 = smov [#allocation6]  }
 0x168   :  { %v674_v13 = vmul.f32 %v670_v6, %v666_v8  ;;  %v1174_v14 = vpop.f32.mrf.mxu1  ;;  %v1148_v15 = vpop.f32.mrf.mxu0  ;;  %v1278_v8 = vld [vmem:[%s1674_s9 + $0x8] sm:$0xff]   ;;  %s1027_s30 = sshll.u32 %s1307_s8, 4  ;;  %s1028_s30 = int_to_ptr.vmem [resolvable:$true] %s1027_s30 }
 0x169   :  { %v610_v16 = vadd.f32 %v1147_v12, %v1051_v52  ;;  %v1175_v17 = vadd.f32 %v1174_v14, %v1173_v9  ;;  %v1279_v9 = vld [vmem:[%s1674_s9] sm:$0xff]   ;;  %s1280_s3 = scalar_lea.vmem %s1028_s30, 32  ;;  %p1285_p1 = scmp.lt.s32.totalorder %s1028_s30, %s1028_s30 }
 0x16a   :  { %v679_v19 = vsel %vm677_vm11, %v674_v13, -inf  ;;  %v1176_v20 = vpop.f32.mrf.mxu1  ;;  %v1149_v21 = vpop.f32.mrf.mxu0  ;;  %p1281_p0 = scmp.ne.s32.totalorder %s1028_s30, %s1280_s3  ;;  %p1286_p2 = scmp.lt.s32.totalorder %s1280_s3, %s1280_s3 }
 0x16b   :  { %v680_v23 = vmax.f32 %v678_v18, %v679_v19  ;;  %v659_v24 = vadd.f32 %v1175_v17, %v610_v16  ;;  %v1150_v25 = vadd.f32 %v1149_v21, %v1148_v15 }
 0x16c   :  { %v1177_v27 = vpop.f32.mrf.mxu1  ;;  %v808_v28 = vpop.f32.mrf.mxu0  ;;  %p1287_p3 = por %p1286_p2, %p1285_p1 }
 0x16d   :  { %v667_v29 = vmax.f32 %v659_v24, 0.0  ;;  %v613_v30 = vadd.f32 %v1150_v25, %v1051_v52  ;;  %v1178_v31 = vadd.f32 %v1177_v27, %v1176_v20  ;;  %v681_v33 = vrot.slane %v680_v23, 4 }
 0x16e   :  { %v809_v35 = vadd.f32 %v1092_v26, %v808_v28  ;;  %v1195_v36 = vpop.f32.mrf.mxu0  ;;  %p1288_p4 = pnand %p1287_p3, %p1281_p0 }
 0x16f   :  { %v662_v37 = vadd.f32 %v1178_v31, %v613_v30  ;;  %v675_v43 = vmul.f32 %v671_v34, %v667_v29  ;;  %v682_v45 = vmax.f32 %v680_v23, %v681_v33 }
 0x170   :  { %817 = vrot.lane.b32.xlu0 %v809_v35, %s1302_s23  ;;  %v811_v41 = vpop.f32.mrf.mxu0  ;;  %v822_v42 = vrot.slane %v809_v35, 2  ;;  %815 = vst.msk [vmem:[#allocation4] sm:$0x3] %vm814_vm12, %v809_v35 }
 0x171   :  { %v668_v44 = vmax.f32 %v662_v37, 0.0  ;;  %v687_v51 = vsel %vm677_vm11, %v675_v43, -inf  ;;  %v683_v54 = vrot.slane %v682_v45, 2 }
 0x172   :  { %v1196_v46 = vpop.f32.mrf.mxu0  ;;  %v832_v47 = vmul.f32 %v822_v42, %v809_v35  ;;  %v824_v48 = vsub.f32 %v809_v35, %v822_v42 }
 0x173   :  { %v676_v49 = vmul.f32 %v672_v38, %v668_v44  ;;  %v684_v57 = vmax.f32 %v682_v45, %v683_v54 }
 0x174   :  { %834 = vrot.lane.b32.xlu0 %v832_v47, %s1304_s22  ;;  %v825_v50 = vand.u32 2147483647, %v824_v48 }
 0x175   :  { %v688_v52 = vsel %vm677_vm11, %v676_v49, -inf  ;;  %v685_v59 = vrot.slane %v684_v57, 1 }
 0x176   :  { %v689_v53 = vmax.f32 %v687_v51, %v688_v52  ;;  %827 = vrot.lane.b32.xlu1 %v825_v50, %s1303_s1 }
 0x177   :  { %v686_v39 = vmax.f32 %v684_v57, %v685_v59 }
 0x178   :  { %v690_v55 = vrot.slane %v689_v53, 4 }
 0x17a   :  { %v691_v56 = vmax.f32 %v689_v53, %v690_v55 }
 0x17c   :  { %v692_v58 = vrot.slane %v691_v56, 2 }
 0x17e   :  { %v693_v60 = vmax.f32 %v691_v56, %v692_v58 }
 0x180   :  { %v694_v61 = vrot.slane %v693_v60, 1 }
 0x182   :  { %v695_v62 = vmax.f32 %v693_v60, %v694_v61 }
 0x184   :  { %v929_v63 = vsel %vm758_vm1, %v695_v62, %v686_v39  ;;  %vm976_vm1 = vcmask 1043456  }
 0x185   :  { %930 = vrot.lane.b32.xlu1 %v929_v63, %s1303_s1  ;;  %v978_v6 = vsel %vm976_vm1, %v1276_v5, 0 }
 0x186   :  { %1210 = vmatpush3.bf16.msra.mxu0 %v978_v6 }
 0x187   :  { %1211 = vmatprep.subr.bf16.mxu0 %v1305_v40 }
 0x18a   :  { %1212 = vmatpush3.bf16.msra.mxu0 %v1277_v7 }
 0x18b   :  { %1213 = vmatprep.subr.bf16.mxu0 %v1305_v40 }
 0x18e   :  { %1214 = vmatpush3.bf16.msra.mxu0 %v1278_v8 }
 0x18f   :  { %1215 = vmatprep.subr.bf16.mxu0 %v1305_v40  ;;  %v1101_v40 = vld [vmem:[%s1675_s10] ss:$0 sm:$0xff] }
 0x192   :  { %1216 = vmatpush3.bf16.msra.mxu0 %v1279_v9 }
 0x1e2   :  { %v818_v0 = vpop.permute.xlu0 %817 }
 0x1e3   :  { %821 = vst.msk [vmem:[#allocation4 - $0x2] sm:$0xc] %vm820_vm13, %v818_v0 }
 0x1e6   :  { %v835_v2 = vpop.permute.xlu0 %834 }
 0x1e8   :  { %v828_v1 = vpop.permute.xlu1 %827 }
 0x1e9   :  { %831 = vst.msk [vmem:[#allocation4] sm:$0x3] %vm830_vm14, %v828_v1 }
 0x1ea   :  { %838 = vst.msk [vmem:[#allocation4] sm:$0x3] %vm837_vm15, %v835_v2 }
 0x1f1   :  { %v839_v3 = vld [vmem:[#allocation4] sm:$0x3] }
 0x1f2   :  { %v840_v4 = vpack.c.bf16 %v839_v3, %v839_v3 }
 0x1f4   :  { %1206 = vmatmul.mubr.msk.bf16.vlgmr.msra.gmra.mxu1 %vm880_vm0, %v840_v4 }
 0x1f7   :  { %v931_v16 = vpop.permute.xlu1 %930 }
 0x2b4   :  { %v918_v11 = vpop.f32.mrf.mxu1 }
 0x2b5   :  { %v919_v12 = vadd.f32 %v1095_v10, %v918_v11 }
 0x2b6   :  { %v1207_v13 = vpop.f32.mrf.mxu1 }
 0x2b7   :  { %v924_v14 = vmax.f32 %v919_v12, 0.0 }
 0x2b8   :  { %v921_v15 = vpop.f32.mrf.mxu1 }
 0x2b9   :  { %926 = vst.msk [vmem:[#allocation5] sm:$0x3] %vm925_vm2, %v924_v14 }
 0x2ba   :  { %934 = vst.msk [vmem:[#allocation5] sm:$0x3] %vm933_vm3, %v931_v16  ;;  %v1208_v17 = vpop.f32.mrf.mxu1 }
 0x2c1   :  { %v935_v18 = vld [vmem:[#allocation5] sm:$0x3] }
 0x2c2   :  { %v936_v19 = vpack.c.bf16 %v935_v18, %v935_v18 }
 0x2c4   :  { %1218 = vmatmul.mubr.msk.bf16.vlgmr.msra.gmra.mxu0 %vm972_vm4, %v936_v19 }
 0x384   :  { %v1014_v20 = vpop.f32.mrf.mxu0 }
 0x385   :  { %v1015_v21 = vadd.f32 %v1101_v40, %v1014_v20 }
 0x386   :  { %v1219_v22 = vpop.f32.mrf.mxu0 }
 0x387   :  { %1020 = vst [vmem:[#allocation6] sm:$0x3] %v1015_v21 }
 0x388   :  { %v1017_v23 = vpop.f32.mrf.mxu0 }
 0x389   :  { %1291 = shalt.err (!%p1288_p4)
}
 0x38a   :  { %1030 = dma.vmem_to_hbm [thread:$0]  %s1028_s30, 32, %s1676_s11, [#allocation7]   ;;  %v1220_v24 = vpop.f32.mrf.mxu0 }
 0x38b   :  { %1300 = dma.done.wait [#allocation7], 32  }
 0x38c   :  { %1301 = vsyncadd [#allocation7], 4294967264 }
 0x38d   :  { %1034 = vsyncpa [#allocation7], 1 }

</bundles_post_ra>
